<compile_context>
chip_gen: v6e
topology: v6e:2x2x1
jax: 0.10.0
libtpu: 0.0.40
codegen_flags: <defaults>
</compile_context>

<pallas_src>
import functools
import jax
import jax.numpy as jnp
from jax.experimental import pallas as pl
from jax.experimental.pallas import tpu as pltpu

# Hidden sizes from MLP2.__init__
HIDDEN = [115, 78, 46, 26, 46, 82, 106, 115]

LANE = 128      # pad every feature dim to this
SUBLANE = 8     # batch rounding granularity
TB_MAX = 256    # batch rows per grid step (keeps h=(TB,128) f32 at 32 vregs)


def _mlp2_kernel(x_ref, *refs):
    # refs = (w1, b1, w2, b2, ..., w9, b9, o_ref)
    o_ref = refs[-1]
    wb_refs = refs[:-1]
    h = x_ref[...]
    n_layers = len(wb_refs) // 2
    for i in range(n_layers):
        w = wb_refs[2 * i][...]
        b = wb_refs[2 * i + 1][...]
        h = jnp.dot(h, w, preferred_element_type=jnp.float32) + b
        h = jnp.maximum(h, 0.0)  # ReLU after every layer, incl. fc9
    o_ref[...] = h


def pad_params(weights, biases):
    """Zero-pad weights/biases to (128,128)/(1,128) ONCE, outside the hot path."""
    padded = []
    for w, b in zip(weights, biases):
        fi, fo = w.shape
        assert fi <= LANE and fo <= LANE, "MLP2 feature dims must be <= 128"
        w_pad = jnp.zeros((LANE, LANE), jnp.float32).at[:fi, :fo].set(w)
        b_pad = jnp.zeros((1, LANE), jnp.float32).at[0, :fo].set(b)
        padded += [w_pad, b_pad]
    return tuple(padded)


@functools.partial(jax.jit, static_argnames=("output_size",))
def mlp2_forward(x, padded_params, output_size):
    """x: (B, input_size) f32; padded_params: output of pad_params()."""
    B, input_size = x.shape
    assert input_size <= LANE, "input_size must be <= 128"

    n_layers = len(padded_params) // 2

    # Batch tiling: TB rows per grid step; small batches collapse to one step.
    B8 = ((B + SUBLANE - 1) // SUBLANE) * SUBLANE
    TB = min(TB_MAX, B8)
    B_pad = ((B + TB - 1) // TB) * TB
    n_steps = B_pad // TB

    x_pad = jnp.zeros((B_pad, LANE), jnp.float32).at[:B, :input_size].set(x)

    # x / out tiled over the batch grid; weights & biases pinned (block (0,0)
    # at every step -> VMEM-resident, DMA'd once).
    in_specs = [pl.BlockSpec((TB, LANE), lambda i: (i, 0))]
    for _ in range(n_layers):
        in_specs.append(pl.BlockSpec((LANE, LANE), lambda i: (0, 0)))
        in_specs.append(pl.BlockSpec((1, LANE), lambda i: (0, 0)))
    out_spec = pl.BlockSpec((TB, LANE), lambda i: (i, 0))

    flops = 2 * n_layers * B_pad * LANE * LANE
    bytes_accessed = (2 * B_pad * LANE + n_layers * (LANE * LANE + LANE)) * 4

    out = pl.pallas_call(
        _mlp2_kernel,
        out_shape=jax.ShapeDtypeStruct((B_pad, LANE), jnp.float32),
        grid=(n_steps,),
        in_specs=in_specs,
        out_specs=out_spec,
        compiler_params=pltpu.CompilerParams(
            dimension_semantics=("parallel",),  # shard batch tiles across TCs (v7x)
        ),
        cost_estimate=pl.CostEstimate(
            flops=flops, transcendentals=0, bytes_accessed=bytes_accessed),
    )(x_pad, *padded_params)

    return out[:B, :output_size]


def _ref_forward(x, weights, biases):
    h = x
    for w, b in zip(weights, biases):
        h = jnp.maximum(h @ w + b, 0.0)
    return h


def init_params(input_size, output_size, key):
    dims = [input_size] + HIDDEN + [output_size]
    weights, biases = [], []
    for i in range(len(dims) - 1):
        key, kw, kb = jax.random.split(key, 3)
        fan_in = dims[i]
        bound = 1.0 / jnp.sqrt(fan_in)  # mimic nn.Linear default uniform init
        weights.append(jax.random.uniform(kw, (dims[i], dims[i + 1]),
                                          jnp.float32, -bound, bound))
        biases.append(jax.random.uniform(kb, (dims[i + 1],),
                                         jnp.float32, -bound, bound))
    return weights, biases


if __name__ == "__main__":
    input_size = 12
    output_size = 5
    batch = 8

    key = jax.random.PRNGKey(0)
    key, kx = jax.random.split(key)
    x = jax.random.normal(kx, (batch, input_size), jnp.float32)
    weights, biases = init_params(input_size, output_size, key)

    # Pad parameters once (hoisted out of the per-call path).
    padded_params = pad_params(weights, biases)

    y = mlp2_forward(x, padded_params, output_size)
    y = jax.block_until_ready(y)

    y_ref = _ref_forward(x, weights, biases)
    assert y.shape == (batch, output_size)
    assert jnp.allclose(y, y_ref, atol=1e-5, rtol=1e-5), "mismatch vs reference"

    print("KERNEL_OK")
</pallas_src>

<mosaic_0001>
module attributes {stable_mosaic.version = 11 : i64} {
  func.func @_mlp2_kernel(%arg0: i32, %arg1: memref<8x128xf32, #tpu.memory_space<vmem>>, %arg2: memref<128x128xf32, #tpu.memory_space<vmem>>, %arg3: memref<1x128xf32, #tpu.memory_space<vmem>>, %arg4: memref<128x128xf32, #tpu.memory_space<vmem>>, %arg5: memref<1x128xf32, #tpu.memory_space<vmem>>, %arg6: memref<128x128xf32, #tpu.memory_space<vmem>>, %arg7: memref<1x128xf32, #tpu.memory_space<vmem>>, %arg8: memref<128x128xf32, #tpu.memory_space<vmem>>, %arg9: memref<1x128xf32, #tpu.memory_space<vmem>>, %arg10: memref<128x128xf32, #tpu.memory_space<vmem>>, %arg11: memref<1x128xf32, #tpu.memory_space<vmem>>, %arg12: memref<128x128xf32, #tpu.memory_space<vmem>>, %arg13: memref<1x128xf32, #tpu.memory_space<vmem>>, %arg14: memref<128x128xf32, #tpu.memory_space<vmem>>, %arg15: memref<1x128xf32, #tpu.memory_space<vmem>>, %arg16: memref<128x128xf32, #tpu.memory_space<vmem>>, %arg17: memref<1x128xf32, #tpu.memory_space<vmem>>, %arg18: memref<128x128xf32, #tpu.memory_space<vmem>>, %arg19: memref<1x128xf32, #tpu.memory_space<vmem>>, %arg20: memref<8x128xf32, #tpu.memory_space<vmem>>) attributes {dimension_semantics = [#tpu.dimension_semantics<parallel>], iteration_bounds = array<i64: 1>, scalar_prefetch = 0 : i64, scratch_operands = 0 : i64, tpu.core_type = #tpu.core_type<tc>, window_params = [{transform_indices = @transform_0, window_bounds = array<i64: 8, 128>}, {pipeline_mode = #tpu.pipeline_mode<synchronous>, transform_indices = @transform_1, window_bounds = array<i64: 128, 128>}, {pipeline_mode = #tpu.pipeline_mode<synchronous>, transform_indices = @transform_2, window_bounds = array<i64: 1, 128>}, {pipeline_mode = #tpu.pipeline_mode<synchronous>, transform_indices = @transform_3, window_bounds = array<i64: 128, 128>}, {pipeline_mode = #tpu.pipeline_mode<synchronous>, transform_indices = @transform_4, window_bounds = array<i64: 1, 128>}, {pipeline_mode = #tpu.pipeline_mode<synchronous>, transform_indices = @transform_5, window_bounds = array<i64: 128, 128>}, {pipeline_mode = #tpu.pipeline_mode<synchronous>, transform_indices = @transform_6, window_bounds = array<i64: 1, 128>}, {pipeline_mode = #tpu.pipeline_mode<synchronous>, transform_indices = @transform_7, window_bounds = array<i64: 128, 128>}, {pipeline_mode = #tpu.pipeline_mode<synchronous>, transform_indices = @transform_8, window_bounds = array<i64: 1, 128>}, {pipeline_mode = #tpu.pipeline_mode<synchronous>, transform_indices = @transform_9, window_bounds = array<i64: 128, 128>}, {pipeline_mode = #tpu.pipeline_mode<synchronous>, transform_indices = @transform_10, window_bounds = array<i64: 1, 128>}, {pipeline_mode = #tpu.pipeline_mode<synchronous>, transform_indices = @transform_11, window_bounds = array<i64: 128, 128>}, {pipeline_mode = #tpu.pipeline_mode<synchronous>, transform_indices = @transform_12, window_bounds = array<i64: 1, 128>}, {pipeline_mode = #tpu.pipeline_mode<synchronous>, transform_indices = @transform_13, window_bounds = array<i64: 128, 128>}, {pipeline_mode = #tpu.pipeline_mode<synchronous>, transform_indices = @transform_14, window_bounds = array<i64: 1, 128>}, {pipeline_mode = #tpu.pipeline_mode<synchronous>, transform_indices = @transform_15, window_bounds = array<i64: 128, 128>}, {pipeline_mode = #tpu.pipeline_mode<synchronous>, transform_indices = @transform_16, window_bounds = array<i64: 1, 128>}, {pipeline_mode = #tpu.pipeline_mode<synchronous>, transform_indices = @transform_17, window_bounds = array<i64: 128, 128>}, {pipeline_mode = #tpu.pipeline_mode<synchronous>, transform_indices = @transform_18, window_bounds = array<i64: 1, 128>}, {transform_indices = @transform_19, window_bounds = array<i64: 8, 128>}]} {
    %c0 = arith.constant 0 : index
    %c0_0 = arith.constant 0 : index
    %0 = vector.load %arg1[%c0, %c0_0] : memref<8x128xf32, #tpu.memory_space<vmem>>, vector<8x128xf32>
    %c0_1 = arith.constant 0 : index
    %c0_2 = arith.constant 0 : index
    %1 = vector.load %arg2[%c0_1, %c0_2] : memref<128x128xf32, #tpu.memory_space<vmem>>, vector<128x128xf32>
    %c0_3 = arith.constant 0 : index
    %c0_4 = arith.constant 0 : index
    %2 = vector.load %arg3[%c0_3, %c0_4] : memref<1x128xf32, #tpu.memory_space<vmem>>, vector<1x128xf32>
    %cst = arith.constant dense<0.000000e+00> : vector<8x128xf32>
    %3 = tpu.matmul %0, %1, %cst {dimension_numbers = #tpu.dot_dimension_numbers<[1], [0], [0], [1], [0, 0, 1, 1], [], []>} : vector<8x128xf32>, vector<128x128xf32>, vector<8x128xf32> -> vector<8x128xf32>
    %4 = vector.broadcast %2 : vector<1x128xf32> to vector<8x128xf32>
    %5 = arith.addf %3, %4 : vector<8x128xf32>
    %cst_5 = arith.constant 0.000000e+00 : f32
    %6 = vector.broadcast %cst_5 : f32 to vector<8x128xf32>
    %7 = arith.maximumf %5, %6 : vector<8x128xf32>
    %c0_6 = arith.constant 0 : index
    %c0_7 = arith.constant 0 : index
    %8 = vector.load %arg4[%c0_6, %c0_7] : memref<128x128xf32, #tpu.memory_space<vmem>>, vector<128x128xf32>
    %c0_8 = arith.constant 0 : index
    %c0_9 = arith.constant 0 : index
    %9 = vector.load %arg5[%c0_8, %c0_9] : memref<1x128xf32, #tpu.memory_space<vmem>>, vector<1x128xf32>
    %cst_10 = arith.constant dense<0.000000e+00> : vector<8x128xf32>
    %10 = tpu.matmul %7, %8, %cst_10 {dimension_numbers = #tpu.dot_dimension_numbers<[1], [0], [0], [1], [0, 0, 1, 1], [], []>} : vector<8x128xf32>, vector<128x128xf32>, vector<8x128xf32> -> vector<8x128xf32>
    %11 = vector.broadcast %9 : vector<1x128xf32> to vector<8x128xf32>
    %12 = arith.addf %10, %11 : vector<8x128xf32>
    %cst_11 = arith.constant 0.000000e+00 : f32
    %13 = vector.broadcast %cst_11 : f32 to vector<8x128xf32>
    %14 = arith.maximumf %12, %13 : vector<8x128xf32>
    %c0_12 = arith.constant 0 : index
    %c0_13 = arith.constant 0 : index
    %15 = vector.load %arg6[%c0_12, %c0_13] : memref<128x128xf32, #tpu.memory_space<vmem>>, vector<128x128xf32>
    %c0_14 = arith.constant 0 : index
    %c0_15 = arith.constant 0 : index
    %16 = vector.load %arg7[%c0_14, %c0_15] : memref<1x128xf32, #tpu.memory_space<vmem>>, vector<1x128xf32>
    %cst_16 = arith.constant dense<0.000000e+00> : vector<8x128xf32>
    %17 = tpu.matmul %14, %15, %cst_16 {dimension_numbers = #tpu.dot_dimension_numbers<[1], [0], [0], [1], [0, 0, 1, 1], [], []>} : vector<8x128xf32>, vector<128x128xf32>, vector<8x128xf32> -> vector<8x128xf32>
    %18 = vector.broadcast %16 : vector<1x128xf32> to vector<8x128xf32>
    %19 = arith.addf %17, %18 : vector<8x128xf32>
    %cst_17 = arith.constant 0.000000e+00 : f32
    %20 = vector.broadcast %cst_17 : f32 to vector<8x128xf32>
    %21 = arith.maximumf %19, %20 : vector<8x128xf32>
    %c0_18 = arith.constant 0 : index
    %c0_19 = arith.constant 0 : index
    %22 = vector.load %arg8[%c0_18, %c0_19] : memref<128x128xf32, #tpu.memory_space<vmem>>, vector<128x128xf32>
    %c0_20 = arith.constant 0 : index
    %c0_21 = arith.constant 0 : index
    %23 = vector.load %arg9[%c0_20, %c0_21] : memref<1x128xf32, #tpu.memory_space<vmem>>, vector<1x128xf32>
    %cst_22 = arith.constant dense<0.000000e+00> : vector<8x128xf32>
    %24 = tpu.matmul %21, %22, %cst_22 {dimension_numbers = #tpu.dot_dimension_numbers<[1], [0], [0], [1], [0, 0, 1, 1], [], []>} : vector<8x128xf32>, vector<128x128xf32>, vector<8x128xf32> -> vector<8x128xf32>
    %25 = vector.broadcast %23 : vector<1x128xf32> to vector<8x128xf32>
    %26 = arith.addf %24, %25 : vector<8x128xf32>
    %cst_23 = arith.constant 0.000000e+00 : f32
    %27 = vector.broadcast %cst_23 : f32 to vector<8x128xf32>
    %28 = arith.maximumf %26, %27 : vector<8x128xf32>
    %c0_24 = arith.constant 0 : index
    %c0_25 = arith.constant 0 : index
    %29 = vector.load %arg10[%c0_24, %c0_25] : memref<128x128xf32, #tpu.memory_space<vmem>>, vector<128x128xf32>
    %c0_26 = arith.constant 0 : index
    %c0_27 = arith.constant 0 : index
    %30 = vector.load %arg11[%c0_26, %c0_27] : memref<1x128xf32, #tpu.memory_space<vmem>>, vector<1x128xf32>
    %cst_28 = arith.constant dense<0.000000e+00> : vector<8x128xf32>
    %31 = tpu.matmul %28, %29, %cst_28 {dimension_numbers = #tpu.dot_dimension_numbers<[1], [0], [0], [1], [0, 0, 1, 1], [], []>} : vector<8x128xf32>, vector<128x128xf32>, vector<8x128xf32> -> vector<8x128xf32>
    %32 = vector.broadcast %30 : vector<1x128xf32> to vector<8x128xf32>
    %33 = arith.addf %31, %32 : vector<8x128xf32>
    %cst_29 = arith.constant 0.000000e+00 : f32
    %34 = vector.broadcast %cst_29 : f32 to vector<8x128xf32>
    %35 = arith.maximumf %33, %34 : vector<8x128xf32>
    %c0_30 = arith.constant 0 : index
    %c0_31 = arith.constant 0 : index
    %36 = vector.load %arg12[%c0_30, %c0_31] : memref<128x128xf32, #tpu.memory_space<vmem>>, vector<128x128xf32>
    %c0_32 = arith.constant 0 : index
    %c0_33 = arith.constant 0 : index
    %37 = vector.load %arg13[%c0_32, %c0_33] : memref<1x128xf32, #tpu.memory_space<vmem>>, vector<1x128xf32>
    %cst_34 = arith.constant dense<0.000000e+00> : vector<8x128xf32>
    %38 = tpu.matmul %35, %36, %cst_34 {dimension_numbers = #tpu.dot_dimension_numbers<[1], [0], [0], [1], [0, 0, 1, 1], [], []>} : vector<8x128xf32>, vector<128x128xf32>, vector<8x128xf32> -> vector<8x128xf32>
    %39 = vector.broadcast %37 : vector<1x128xf32> to vector<8x128xf32>
    %40 = arith.addf %38, %39 : vector<8x128xf32>
    %cst_35 = arith.constant 0.000000e+00 : f32
    %41 = vector.broadcast %cst_35 : f32 to vector<8x128xf32>
    %42 = arith.maximumf %40, %41 : vector<8x128xf32>
    %c0_36 = arith.constant 0 : index
    %c0_37 = arith.constant 0 : index
    %43 = vector.load %arg14[%c0_36, %c0_37] : memref<128x128xf32, #tpu.memory_space<vmem>>, vector<128x128xf32>
    %c0_38 = arith.constant 0 : index
    %c0_39 = arith.constant 0 : index
    %44 = vector.load %arg15[%c0_38, %c0_39] : memref<1x128xf32, #tpu.memory_space<vmem>>, vector<1x128xf32>
    %cst_40 = arith.constant dense<0.000000e+00> : vector<8x128xf32>
    %45 = tpu.matmul %42, %43, %cst_40 {dimension_numbers = #tpu.dot_dimension_numbers<[1], [0], [0], [1], [0, 0, 1, 1], [], []>} : vector<8x128xf32>, vector<128x128xf32>, vector<8x128xf32> -> vector<8x128xf32>
    %46 = vector.broadcast %44 : vector<1x128xf32> to vector<8x128xf32>
    %47 = arith.addf %45, %46 : vector<8x128xf32>
    %cst_41 = arith.constant 0.000000e+00 : f32
    %48 = vector.broadcast %cst_41 : f32 to vector<8x128xf32>
    %49 = arith.maximumf %47, %48 : vector<8x128xf32>
    %c0_42 = arith.constant 0 : index
    %c0_43 = arith.constant 0 : index
    %50 = vector.load %arg16[%c0_42, %c0_43] : memref<128x128xf32, #tpu.memory_space<vmem>>, vector<128x128xf32>
    %c0_44 = arith.constant 0 : index
    %c0_45 = arith.constant 0 : index
    %51 = vector.load %arg17[%c0_44, %c0_45] : memref<1x128xf32, #tpu.memory_space<vmem>>, vector<1x128xf32>
    %cst_46 = arith.constant dense<0.000000e+00> : vector<8x128xf32>
    %52 = tpu.matmul %49, %50, %cst_46 {dimension_numbers = #tpu.dot_dimension_numbers<[1], [0], [0], [1], [0, 0, 1, 1], [], []>} : vector<8x128xf32>, vector<128x128xf32>, vector<8x128xf32> -> vector<8x128xf32>
    %53 = vector.broadcast %51 : vector<1x128xf32> to vector<8x128xf32>
    %54 = arith.addf %52, %53 : vector<8x128xf32>
    %cst_47 = arith.constant 0.000000e+00 : f32
    %55 = vector.broadcast %cst_47 : f32 to vector<8x128xf32>
    %56 = arith.maximumf %54, %55 : vector<8x128xf32>
    %c0_48 = arith.constant 0 : index
    %c0_49 = arith.constant 0 : index
    %57 = vector.load %arg18[%c0_48, %c0_49] : memref<128x128xf32, #tpu.memory_space<vmem>>, vector<128x128xf32>
    %c0_50 = arith.constant 0 : index
    %c0_51 = arith.constant 0 : index
    %58 = vector.load %arg19[%c0_50, %c0_51] : memref<1x128xf32, #tpu.memory_space<vmem>>, vector<1x128xf32>
    %cst_52 = arith.constant dense<0.000000e+00> : vector<8x128xf32>
    %59 = tpu.matmul %56, %57, %cst_52 {dimension_numbers = #tpu.dot_dimension_numbers<[1], [0], [0], [1], [0, 0, 1, 1], [], []>} : vector<8x128xf32>, vector<128x128xf32>, vector<8x128xf32> -> vector<8x128xf32>
    %60 = vector.broadcast %58 : vector<1x128xf32> to vector<8x128xf32>
    %61 = arith.addf %59, %60 : vector<8x128xf32>
    %cst_53 = arith.constant 0.000000e+00 : f32
    %62 = vector.broadcast %cst_53 : f32 to vector<8x128xf32>
    %63 = arith.maximumf %61, %62 : vector<8x128xf32>
    %c0_54 = arith.constant 0 : index
    %c0_55 = arith.constant 0 : index
    %64 = vector.load %arg20[%c0_54, %c0_55] : memref<8x128xf32, #tpu.memory_space<vmem>>, vector<8x128xf32>
    tpu.vector_store %arg20[%c0_54, %c0_55], %63 {strides = array<i32>} : memref<8x128xf32, #tpu.memory_space<vmem>>, vector<8x128xf32>,
    return
  }
  func.func @transform_0(%arg0: i32) -> (i32, i32) {
    %c0_i32 = arith.constant 0 : i32
    %c0_i32_0 = arith.constant 0 : i32
    return %arg0, %c0_i32 : i32, i32
  }
  func.func @transform_1(%arg0: i32) -> (i32, i32) {
    %c0_i32 = arith.constant 0 : i32
    %c0_i32_0 = arith.constant 0 : i32
    %c0_i32_1 = arith.constant 0 : i32
    return %c0_i32, %c0_i32_0 : i32, i32
  }
  func.func @transform_2(%arg0: i32) -> (i32, i32) {
    %c0_i32 = arith.constant 0 : i32
    %c0_i32_0 = arith.constant 0 : i32
    %c0_i32_1 = arith.constant 0 : i32
    return %c0_i32, %c0_i32_0 : i32, i32
  }
  func.func @transform_3(%arg0: i32) -> (i32, i32) {
    %c0_i32 = arith.constant 0 : i32
    %c0_i32_0 = arith.constant 0 : i32
    %c0_i32_1 = arith.constant 0 : i32
    return %c0_i32, %c0_i32_0 : i32, i32
  }
  func.func @transform_4(%arg0: i32) -> (i32, i32) {
    %c0_i32 = arith.constant 0 : i32
    %c0_i32_0 = arith.constant 0 : i32
    %c0_i32_1 = arith.constant 0 : i32
    return %c0_i32, %c0_i32_0 : i32, i32
  }
  func.func @transform_5(%arg0: i32) -> (i32, i32) {
    %c0_i32 = arith.constant 0 : i32
    %c0_i32_0 = arith.constant 0 : i32
    %c0_i32_1 = arith.constant 0 : i32
    return %c0_i32, %c0_i32_0 : i32, i32
  }
  func.func @transform_6(%arg0: i32) -> (i32, i32) {
    %c0_i32 = arith.constant 0 : i32
    %c0_i32_0 = arith.constant 0 : i32
    %c0_i32_1 = arith.constant 0 : i32
    return %c0_i32, %c0_i32_0 : i32, i32
  }
  func.func @transform_7(%arg0: i32) -> (i32, i32) {
    %c0_i32 = arith.constant 0 : i32
    %c0_i32_0 = arith.constant 0 : i32
    %c0_i32_1 = arith.constant 0 : i32
    return %c0_i32, %c0_i32_0 : i32, i32
  }
  func.func @transform_8(%arg0: i32) -> (i32, i32) {
    %c0_i32 = arith.constant 0 : i32
    %c0_i32_0 = arith.constant 0 : i32
    %c0_i32_1 = arith.constant 0 : i32
    return %c0_i32, %c0_i32_0 : i32, i32
  }
  func.func @transform_9(%arg0: i32) -> (i32, i32) {
    %c0_i32 = arith.constant 0 : i32
    %c0_i32_0 = arith.constant 0 : i32
    %c0_i32_1 = arith.constant 0 : i32
    return %c0_i32, %c0_i32_0 : i32, i32
  }
  func.func @transform_10(%arg0: i32) -> (i32, i32) {
    %c0_i32 = arith.constant 0 : i32
    %c0_i32_0 = arith.constant 0 : i32
    %c0_i32_1 = arith.constant 0 : i32
    return %c0_i32, %c0_i32_0 : i32, i32
  }
  func.func @transform_11(%arg0: i32) -> (i32, i32) {
    %c0_i32 = arith.constant 0 : i32
    %c0_i32_0 = arith.constant 0 : i32
    %c0_i32_1 = arith.constant 0 : i32
    return %c0_i32, %c0_i32_0 : i32, i32
  }
  func.func @transform_12(%arg0: i32) -> (i32, i32) {
    %c0_i32 = arith.constant 0 : i32
    %c0_i32_0 = arith.constant 0 : i32
    %c0_i32_1 = arith.constant 0 : i32
    return %c0_i32, %c0_i32_0 : i32, i32
  }
  func.func @transform_13(%arg0: i32) -> (i32, i32) {
    %c0_i32 = arith.constant 0 : i32
    %c0_i32_0 = arith.constant 0 : i32
    %c0_i32_1 = arith.constant 0 : i32
    return %c0_i32, %c0_i32_0 : i32, i32
  }
  func.func @transform_14(%arg0: i32) -> (i32, i32) {
    %c0_i32 = arith.constant 0 : i32
    %c0_i32_0 = arith.constant 0 : i32
    %c0_i32_1 = arith.constant 0 : i32
    return %c0_i32, %c0_i32_0 : i32, i32
  }
  func.func @transform_15(%arg0: i32) -> (i32, i32) {
    %c0_i32 = arith.constant 0 : i32
    %c0_i32_0 = arith.constant 0 : i32
    %c0_i32_1 = arith.constant 0 : i32
    return %c0_i32, %c0_i32_0 : i32, i32
  }
  func.func @transform_16(%arg0: i32) -> (i32, i32) {
    %c0_i32 = arith.constant 0 : i32
    %c0_i32_0 = arith.constant 0 : i32
    %c0_i32_1 = arith.constant 0 : i32
    return %c0_i32, %c0_i32_0 : i32, i32
  }
  func.func @transform_17(%arg0: i32) -> (i32, i32) {
    %c0_i32 = arith.constant 0 : i32
    %c0_i32_0 = arith.constant 0 : i32
    %c0_i32_1 = arith.constant 0 : i32
    return %c0_i32, %c0_i32_0 : i32, i32
  }
  func.func @transform_18(%arg0: i32) -> (i32, i32) {
    %c0_i32 = arith.constant 0 : i32
    %c0_i32_0 = arith.constant 0 : i32
    %c0_i32_1 = arith.constant 0 : i32
    return %c0_i32, %c0_i32_0 : i32, i32
  }
  func.func @transform_19(%arg0: i32) -> (i32, i32) {
    %c0_i32 = arith.constant 0 : i32
    %c0_i32_0 = arith.constant 0 : i32
    return %arg0, %c0_i32 : i32, i32
  }
}

</mosaic_0001>

<bundles_post_ra>
// kernel: mlp2_forward.1
= control target key start
LH: loop header
LB: loop body
LE: loop exit
PB: predicated region body
PF: predicated region fallthrough
CT: control target
= control target key end

     0   :  { %s2118_s0 = inlined_call_operand.vmem [shape: f32[8,128], index: 0, kind: input, shape index: {}]   ;;  %s2119_s1 = inlined_call_operand.hbm [shape: f32[128,128], index: 1, kind: input, shape index: {}]   ;;  %s2120_s2 = inlined_call_operand.vmem [shape: f32[1,128], index: 2, kind: input, shape index: {}]   ;;  %s2121_s3 = inlined_call_operand.hbm [shape: f32[128,128], index: 3, kind: input, shape index: {}]   ;;  %s2122_s4 = inlined_call_operand.vmem [shape: f32[1,128], index: 4, kind: input, shape index: {}]   ;;  %s2123_s5 = inlined_call_operand.hbm [shape: f32[128,128], index: 5, kind: input, shape index: {}]   ;;  %s2124_s6 = inlined_call_operand.vmem [shape: f32[1,128], index: 6, kind: input, shape index: {}]   ;;  %s2125_s7 = inlined_call_operand.hbm [shape: f32[128,128], index: 7, kind: input, shape index: {}]   ;;  %s2126_s8 = inlined_call_operand.vmem [shape: f32[1,128], index: 8, kind: input, shape index: {}]   ;;  %s2127_s9 = inlined_call_operand.hbm [shape: f32[128,128], index: 9, kind: input, shape index: {}]   ;;  %s2128_s10 = inlined_call_operand.vmem [shape: f32[1,128], index: 10, kind: input, shape index: {}]   ;;  %s2129_s11 = inlined_call_operand.hbm [shape: f32[128,128], index: 11, kind: input, shape index: {}]   ;;  %s2130_s12 = inlined_call_operand.vmem [shape: f32[1,128], index: 12, kind: input, shape index: {}]   ;;  %s2131_s13 = inlined_call_operand.hbm [shape: f32[128,128], index: 13, kind: input, shape index: {}]   ;;  %s2132_s14 = inlined_call_operand.vmem [shape: f32[1,128], index: 14, kind: input, shape index: {}]   ;;  %s2133_s15 = inlined_call_operand.hbm [shape: f32[128,128], index: 15, kind: input, shape index: {}]   ;;  %s2134_s16 = inlined_call_operand.vmem [shape: f32[1,128], index: 16, kind: input, shape index: {}]   ;;  %s2135_s17 = inlined_call_operand.hbm [shape: f32[128,128], index: 17, kind: input, shape index: {}]   ;;  %s2136_s18 = inlined_call_operand.vmem [shape: f32[1,128], index: 18, kind: input, shape index: {}]   ;;  %s2137_s19 = inlined_call_operand.hbm [shape: f32[8,128], index: 19, kind: output, shape index: {}]  }
   0x1   :  { %2138 = sst [smem:[#allocation24_spill]] %s2118_s0 }
   0x2   :  { %2139 = sst [smem:[#allocation25_spill]] %s2119_s1 }
   0x3   :  { %2140 = sst [smem:[#allocation26_spill]] %s2120_s2 }
   0x4   :  { %2141 = sst [smem:[#allocation27_spill]] %s2121_s3 }
   0x5   :  { %24 = vsyncpa [#allocation3], 0 }
   0x6   :  { %25 = vsyncpa [#allocation6], 0 }
   0x7   :  { %26 = vsyncpa [#allocation9], 0 }
   0x8   :  { %27 = vsyncpa [#allocation12], 0 }
   0x9   :  { %28 = vsyncpa [#allocation15], 0 }
   0xa   :  { %29 = vsyncpa [#allocation4], 0  ;;  %s1755_s0 = smov [#allocation5]   ;;  %s1756_s20 = smov [#allocation8]  }
   0xb   :  { %s51_s30 = sshll.u32 %s1755_s0, 4  ;;  %s79_s21 = sshll.u32 %s1756_s20, 4  ;;  %s52_s30 = int_to_ptr.vmem [resolvable:$true] %s51_s30  ;;  %s80_s21 = int_to_ptr.vmem [resolvable:$true] %s79_s21 }
   0xc   :  { %s1551_s1 = scalar_lea.vmem %s52_s30, 2048  ;;  %p1556_p1 = scmp.lt.s32.totalorder %s52_s30, %s52_s30 }
   0xd   :  { %p1552_p0 = scmp.ne.s32.totalorder %s52_s30, %s1551_s1  ;;  %p1557_p2 = scmp.lt.s32.totalorder %s1551_s1, %s1551_s1 }
   0xf   :  { %p1558_p3 = por %p1557_p2, %p1556_p1 }
  0x11   :  { %p1559_p4 = pnand %p1558_p3, %p1552_p0 }
  0x13   :  { %1562 = shalt.err (!%p1559_p4)
}
  0x14   :  { %s1757_s22 = smov 128   ;;  %s1758_s2 = smov 8  }
  0x15   :  { %s2142_s25 = sld [smem:[#allocation27_spill]]  ;;  %s1571_s3 = scalar_lea.vmem %s80_s21, 2048 }
  0x16   :  { %p1572_p5 = scmp.ne.s32.totalorder %s80_s21, %s1571_s3  ;;  %p1576_p6 = scmp.lt.s32.totalorder %s80_s21, %s80_s21 }
  0x17   :  { %p1577_p7 = scmp.lt.s32.totalorder %s1571_s3, %s1571_s3 }
  0x19   :  { %p1578_p8 = por %p1577_p7, %p1576_p6 }
  0x1b   :  { %57 = dma.hbm_to_vmem [thread:$0]  %s2142_s25, 2048, %s52_s30, [#allocation6], %s1757_s22, %s1757_s22, %s1758_s2  }
  0x1c   :  { %p1579_p9 = pnand %p1578_p8, %p1572_p5 }
  0x1e   :  { %1582 = shalt.err (!%p1579_p9)
}
  0x1f   :  { %85 = dma.hbm_to_vmem [thread:$0]  %s2125_s7, 2048, %s80_s21, [#allocation9], %s1757_s22, %s1757_s22, %s1758_s2  }
  0x20   :  { %s1759_s28 = smov [#allocation11]   ;;  %s1760_s0 = smov [#allocation14]  }
  0x21   :  { %s107_s29 = sshll.u32 %s1759_s28, 4  ;;  %s135_s20 = sshll.u32 %s1760_s0, 4  ;;  %s108_s29 = int_to_ptr.vmem [resolvable:$true] %s107_s29  ;;  %s136_s20 = int_to_ptr.vmem [resolvable:$true] %s135_s20 }
  0x22   :  { %s1591_s30 = scalar_lea.vmem %s108_s29, 2048  ;;  %p1596_p11 = scmp.lt.s32.totalorder %s108_s29, %s108_s29 }
  0x23   :  { %p1592_p10 = scmp.ne.s32.totalorder %s108_s29, %s1591_s30  ;;  %p1597_p12 = scmp.lt.s32.totalorder %s1591_s30, %s1591_s30 }
  0x25   :  { %p1598_p13 = por %p1597_p12, %p1596_p11 }
  0x27   :  { %p1599_p0 = pnand %p1598_p13, %p1592_p10 }
  0x29   :  { %1602 = shalt.err (!%p1599_p0)
}
  0x2a   :  { %113 = dma.hbm_to_vmem [thread:$0]  %s2129_s11, 2048, %s108_s29, [#allocation12], %s1757_s22, %s1757_s22, %s1758_s2  }
  0x2b   :  { %s1611_s7 = scalar_lea.vmem %s136_s20, 2048  ;;  %p1616_p2 = scmp.lt.s32.totalorder %s136_s20, %s136_s20 }
  0x2c   :  { %p1612_p1 = scmp.ne.s32.totalorder %s136_s20, %s1611_s7  ;;  %p1617_p3 = scmp.lt.s32.totalorder %s1611_s7, %s1611_s7 }
  0x2e   :  { %p1618_p4 = por %p1617_p3, %p1616_p2 }
  0x30   :  { %p1619_p5 = pnand %p1618_p4, %p1612_p1 }
  0x32   :  { %1622 = shalt.err (!%p1619_p5)
}
  0x33   :  { %141 = dma.hbm_to_vmem [thread:$0]  %s2133_s15, 2048, %s136_s20, [#allocation15], %s1757_s22, %s1757_s22, %s1758_s2  }
  0x34   :  { %s1761_s25 = smov [#allocation2]   ;;  %s1762_s26 = smov [#allocation7]  }
  0x35   :  { %s37_s3 = sshll.u32 %s1761_s25, 4  ;;  %s65_s27 = sshll.u32 %s1762_s26, 4  ;;  %s38_s3 = int_to_ptr.vmem [resolvable:$true] %s37_s3  ;;  %s66_s27 = int_to_ptr.vmem [resolvable:$true] %s65_s27 }
  0x36   :  { %s1631_s11 = scalar_lea.vmem %s38_s3, 2048  ;;  %p1636_p7 = scmp.lt.s32.totalorder %s38_s3, %s38_s3 }
  0x37   :  { %p1632_p6 = scmp.ne.s32.totalorder %s38_s3, %s1631_s11  ;;  %p1637_p8 = scmp.lt.s32.totalorder %s1631_s11, %s1631_s11 }
  0x39   :  { %p1638_p9 = por %p1637_p8, %p1636_p7 }
  0x3b   :  { %p1639_p10 = pnand %p1638_p9, %p1632_p6 }
  0x3d   :  { %1642 = shalt.err (!%p1639_p10)
}
  0x3e   :  { %s2143_s0 = sld [smem:[#allocation25_spill]]  ;;  %s1651_s15 = scalar_lea.vmem %s66_s27, 2048 }
  0x3f   :  { %p1652_p11 = scmp.ne.s32.totalorder %s66_s27, %s1651_s15  ;;  %p1656_p12 = scmp.lt.s32.totalorder %s66_s27, %s66_s27 }
  0x40   :  { %p1657_p13 = scmp.lt.s32.totalorder %s1651_s15, %s1651_s15 }
  0x42   :  { %p1658_p0 = por %p1657_p13, %p1656_p12 }
  0x44   :  { %43 = dma.hbm_to_vmem [thread:$0]  %s2143_s0, 2048, %s38_s3, [#allocation3], %s1757_s22, %s1757_s22, %s1758_s2  }
  0x45   :  { %p1659_p1 = pnand %p1658_p0, %p1652_p11 }
  0x47   :  { %1662 = shalt.err (!%p1659_p1)
}
  0x48   :  { %71 = dma.hbm_to_vmem [thread:$0]  %s2123_s5, 2048, %s66_s27, [#allocation6], %s1757_s22, %s1757_s22, %s1758_s2  }
  0x49   :  { %s1763_s1 = smov [#allocation10]   ;;  %s1764_s7 = smov [#allocation13]  }
  0x4a   :  { %s93_s23 = sshll.u32 %s1763_s1, 4  ;;  %s121_s21 = sshll.u32 %s1764_s7, 4  ;;  %s94_s23 = int_to_ptr.vmem [resolvable:$true] %s93_s23  ;;  %s122_s21 = int_to_ptr.vmem [resolvable:$true] %s121_s21 }
  0x4b   :  { %s1671_s24 = scalar_lea.vmem %s94_s23, 2048  ;;  %p1676_p3 = scmp.lt.s32.totalorder %s94_s23, %s94_s23 }
  0x4c   :  { %p1672_p2 = scmp.ne.s32.totalorder %s94_s23, %s1671_s24  ;;  %p1677_p4 = scmp.lt.s32.totalorder %s1671_s24, %s1671_s24 }
  0x4e   :  { %p1678_p5 = por %p1677_p4, %p1676_p3 }
  0x50   :  { %p1679_p6 = pnand %p1678_p5, %p1672_p2 }
  0x52   :  { %1682 = shalt.err (!%p1679_p6)
}
  0x53   :  { %99 = dma.hbm_to_vmem [thread:$0]  %s2127_s9, 2048, %s94_s23, [#allocation9], %s1757_s22, %s1757_s22, %s1758_s2  }
  0x54   :  { %s1691_s5 = scalar_lea.vmem %s122_s21, 2048  ;;  %p1696_p8 = scmp.lt.s32.totalorder %s122_s21, %s122_s21 }
  0x55   :  { %p1692_p7 = scmp.ne.s32.totalorder %s122_s21, %s1691_s5  ;;  %p1697_p9 = scmp.lt.s32.totalorder %s1691_s5, %s1691_s5 }
  0x57   :  { %p1698_p10 = por %p1697_p9, %p1696_p8 }
  0x59   :  { %p1699_p11 = pnand %p1698_p10, %p1692_p7 }
  0x5b   :  { %1702 = shalt.err (!%p1699_p11)
}
  0x5c   :  { %127 = dma.hbm_to_vmem [thread:$0]  %s2131_s13, 2048, %s122_s21, [#allocation12], %s1757_s22, %s1757_s22, %s1758_s2  }
  0x5d   :  { %s1765_s11 = smov [#allocation16]  }
  0x5e   :  { %s149_s28 = sshll.u32 %s1765_s11, 4  ;;  %s150_s28 = int_to_ptr.vmem [resolvable:$true] %s149_s28 }
  0x5f   :  { %s1711_s29 = scalar_lea.vmem %s150_s28, 2048  ;;  %p1716_p13 = scmp.lt.s32.totalorder %s150_s28, %s150_s28 }
  0x60   :  { %p1712_p12 = scmp.ne.s32.totalorder %s150_s28, %s1711_s29  ;;  %p1717_p0 = scmp.lt.s32.totalorder %s1711_s29, %s1711_s29 }
  0x62   :  { %p1718_p1 = por %p1717_p0, %p1716_p13 }
  0x64   :  { %p1719_p2 = pnand %p1718_p1, %p1712_p12 }
  0x66   :  { %1722 = shalt.err (!%p1719_p2)
}
  0x67   :  { %155 = dma.hbm_to_vmem [thread:$0]  %s2135_s17, 2048, %s150_s28, [#allocation15], %s1757_s22, %s1757_s22, %s1758_s2  }
  0x68   :  { %1743 = dma.done.wait [#allocation3], 2048  }
  0x69   :  { %1744 = vsyncadd [#allocation3], 4294965248 }
  0x6a   :  { %1745 = dma.done.wait [#allocation6], 4096  }
  0x6b   :  { %1746 = vsyncadd [#allocation6], 4294963200 }
  0x6c   :  { %1747 = dma.done.wait [#allocation9], 4096  }
  0x6d   :  { %1748 = vsyncadd [#allocation9], 4294963200 }
  0x6e   :  { %1749 = dma.done.wait [#allocation12], 4096  }
  0x6f   :  { %1750 = vsyncadd [#allocation12], 4294963200 }
  0x70   :  { %1751 = dma.done.wait [#allocation15], 4096  }
  0x71   :  { %1752 = vsyncadd [#allocation15], 4294963200  ;;  %v1766_v0 = vmov 0.0   ;;  %vm1767_vm0 = vmmov 0   ;;  %v201_v1 = vld [vmem:[#allocation2 + $0x78] sm:$0xff]  ;;  %v200_v2 = vld [vmem:[#allocation2 + $0x70] sm:$0xff] }
  0x72   :  { %1214 = vmatprep.subr.mxu0 %v1766_v0  ;;  %1246 = vmatprep.mubr.msk.f32.mxu0 %vm1767_vm0, %v1766_v0  ;;  %v199_v3 = vld [vmem:[#allocation2 + $0x68] sm:$0xff]  ;;  %v198_v4 = vld [vmem:[#allocation2 + $0x60] sm:$0xff]  ;;  %v295_v5 = vld [vmem:[#allocation5 + $0x78] sm:$0xff]  ;;  %s2144_s22 = sld [smem:[#allocation24_spill]]  ;;  %s1768_s27 = smov [#allocation17]  }
  0x73   :  { %1249 = vmatprep.subr.mxu1 %v1766_v0  ;;  %1281 = vmatprep.mubr.msk.f32.mxu1 %vm1767_vm0, %v1766_v0  ;;  %v197_v6 = vld [vmem:[#allocation2 + $0x58] sm:$0xff]  ;;  %v294_v7 = vld [vmem:[#allocation5 + $0x70] sm:$0xff]  ;;  %v293_v8 = vld [vmem:[#allocation5 + $0x68] sm:$0xff]  ;;  %s2145_s20 = sld [smem:[#allocation26_spill]]  ;;  %s1039_s11 = sshll.u32 %s1768_s27, 4  ;;  %s1040_s11 = int_to_ptr.vmem [resolvable:$true] %s1039_s11 }
  0x74   :  { %1215 = vmatpush3.msra.mxu0 %v201_v1  ;;  %1250 = vmatpush3.msra.mxu1 %v295_v5  ;;  %v196_v9 = vld [vmem:[#allocation2 + $0x50] sm:$0xff]  ;;  %v292_v10 = vld [vmem:[#allocation5 + $0x60] sm:$0xff]  ;;  %v195_v11 = vld [vmem:[#allocation2 + $0x48] sm:$0xff]  ;;  %s1723_s28 = scalar_lea.vmem %s1040_s11, 128  ;;  %p1728_p4 = scmp.lt.s32.totalorder %s1040_s11, %s1040_s11 }
  0x75   :  { %1216 = vmatprep.subr.mxu0 %v1766_v0  ;;  %1251 = vmatprep.subr.mxu1 %v1766_v0  ;;  %v291_v12 = vld [vmem:[#allocation5 + $0x58] sm:$0xff]  ;;  %v194_v13 = vld [vmem:[#allocation2 + $0x40] sm:$0xff]  ;;  %v290_v14 = vld [vmem:[#allocation5 + $0x50] sm:$0xff]  ;;  %p1724_p3 = scmp.ne.s32.totalorder %s1040_s11, %s1723_s28  ;;  %p1729_p5 = scmp.lt.s32.totalorder %s1723_s28, %s1723_s28 }
  0x76   :  { %1217 = vmatpush3.msra.mxu0 %v200_v2  ;;  %1252 = vmatpush3.msra.mxu1 %v294_v7  ;;  %v193_v15 = vld [vmem:[#allocation2 + $0x38] sm:$0xff]  ;;  %v289_v16 = vld [vmem:[#allocation5 + $0x48] sm:$0xff]  ;;  %v192_v17 = vld [vmem:[#allocation2 + $0x30] sm:$0xff] }
  0x77   :  { %1218 = vmatprep.subr.mxu0 %v1766_v0  ;;  %1253 = vmatprep.subr.mxu1 %v1766_v0  ;;  %v288_v18 = vld [vmem:[#allocation5 + $0x40] sm:$0xff]  ;;  %v191_v19 = vld [vmem:[#allocation2 + $0x28] sm:$0xff]  ;;  %v287_v20 = vld [vmem:[#allocation5 + $0x38] sm:$0xff]  ;;  %p1730_p6 = por %p1729_p5, %p1728_p4 }
  0x78   :  { %1219 = vmatpush3.msra.mxu0 %v199_v3  ;;  %1254 = vmatpush3.msra.mxu1 %v293_v8  ;;  %v190_v21 = vld [vmem:[#allocation2 + $0x20] sm:$0xff]  ;;  %v286_v22 = vld [vmem:[#allocation5 + $0x30] sm:$0xff]  ;;  %v189_v23 = vld [vmem:[#allocation2 + $0x18] sm:$0xff] }
  0x79   :  { %1220 = vmatprep.subr.mxu0 %v1766_v0  ;;  %1255 = vmatprep.subr.mxu1 %v1766_v0  ;;  %v285_v24 = vld [vmem:[#allocation5 + $0x28] sm:$0xff]  ;;  %v188_v25 = vld [vmem:[#allocation2 + $0x10] sm:$0xff]  ;;  %v284_v26 = vld [vmem:[#allocation5 + $0x20] sm:$0xff]  ;;  %p1731_p7 = pnand %p1730_p6, %p1724_p3 }
  0x7a   :  { %1221 = vmatpush3.msra.mxu0 %v198_v4  ;;  %1256 = vmatpush3.msra.mxu1 %v292_v10  ;;  %v187_v27 = vld [vmem:[#allocation2 + $0x8] sm:$0xff]  ;;  %v283_v28 = vld [vmem:[#allocation5 + $0x18] sm:$0xff]  ;;  %v186_v29 = vld [vmem:[#allocation2] sm:$0xff] }
  0x7b   :  { %1222 = vmatprep.subr.mxu0 %v1766_v0  ;;  %1257 = vmatprep.subr.mxu1 %v1766_v0  ;;  %v185_v30 = vld [vmem:[%s2144_s22] sm:$0xff]  ;;  %v282_v31 = vld [vmem:[#allocation5 + $0x10] sm:$0xff]  ;;  %v281_v32 = vld [vmem:[#allocation5 + $0x8] sm:$0xff] }
  0x7c   :  { %1223 = vmatpush3.msra.mxu0 %v197_v6  ;;  %1258 = vmatpush3.msra.mxu1 %v291_v12  ;;  %v280_v33 = vld [vmem:[#allocation5] sm:$0xff]  ;;  %v389_v34 = vld [vmem:[#allocation7 + $0x78] sm:$0xff]  ;;  %v388_v35 = vld [vmem:[#allocation7 + $0x70] sm:$0xff] }
  0x7d   :  { %1224 = vmatprep.subr.mxu0 %v1766_v0  ;;  %1259 = vmatprep.subr.mxu1 %v1766_v0  ;;  %v387_v36 = vld [vmem:[#allocation7 + $0x68] sm:$0xff]  ;;  %v386_v37 = vld [vmem:[#allocation7 + $0x60] sm:$0xff]  ;;  %v385_v38 = vld [vmem:[#allocation7 + $0x58] sm:$0xff] }
  0x7e   :  { %1225 = vmatpush3.msra.mxu0 %v196_v9  ;;  %1260 = vmatpush3.msra.mxu1 %v290_v14  ;;  %v384_v39 = vld [vmem:[#allocation7 + $0x50] sm:$0xff]  ;;  %v383_v40 = vld [vmem:[#allocation7 + $0x48] sm:$0xff]  ;;  %v382_v41 = vld [vmem:[#allocation7 + $0x40] sm:$0xff] }
  0x7f   :  { %1226 = vmatprep.subr.mxu0 %v1766_v0  ;;  %1261 = vmatprep.subr.mxu1 %v1766_v0  ;;  %v381_v42 = vld [vmem:[#allocation7 + $0x38] sm:$0xff]  ;;  %v380_v43 = vld [vmem:[#allocation7 + $0x30] sm:$0xff]  ;;  %v379_v44 = vld [vmem:[#allocation7 + $0x28] sm:$0xff] }
  0x80   :  { %1227 = vmatpush3.msra.mxu0 %v195_v11  ;;  %1262 = vmatpush3.msra.mxu1 %v289_v16  ;;  %v378_v45 = vld [vmem:[#allocation7 + $0x20] sm:$0xff]  ;;  %v377_v46 = vld [vmem:[#allocation7 + $0x18] sm:$0xff]  ;;  %v376_v52 = vld [vmem:[#allocation7 + $0x10] sm:$0xff] }
  0x81   :  { %1228 = vmatprep.subr.mxu0 %v1766_v0  ;;  %1263 = vmatprep.subr.mxu1 %v1766_v0  ;;  %v1052_v47 = vld [vmem:[%s2145_s20] ss:$0 sm:$0xff]  ;;  %v375_v53 = vld [vmem:[#allocation7 + $0x8] sm:$0xff]  ;;  %v483_v55 = vld [vmem:[#allocation8 + $0x78] sm:$0xff] }
  0x82   :  { %1229 = vmatpush3.msra.mxu0 %v194_v13  ;;  %1264 = vmatpush3.msra.mxu1 %v288_v18  ;;  %v374_v54 = vld [vmem:[#allocation7] sm:$0xff]  ;;  %v482_v56 = vld [vmem:[#allocation8 + $0x70] sm:$0xff]  ;;  %v481_v57 = vld [vmem:[#allocation8 + $0x68] sm:$0xff] }
  0x83   :  { %1230 = vmatprep.subr.mxu0 %v1766_v0  ;;  %1265 = vmatprep.subr.mxu1 %v1766_v0  ;;  %v480_v58 = vld [vmem:[#allocation8 + $0x60] sm:$0xff]  ;;  %v479_v59 = vld [vmem:[#allocation8 + $0x58] sm:$0xff]  ;;  %v478_v60 = vld [vmem:[#allocation8 + $0x50] sm:$0xff] }
  0x84   :  { %1231 = vmatpush3.msra.mxu0 %v193_v15  ;;  %1266 = vmatpush3.msra.mxu1 %v287_v20  ;;  %v477_v61 = vld [vmem:[#allocation8 + $0x48] sm:$0xff]  ;;  %v476_v62 = vld [vmem:[#allocation8 + $0x40] sm:$0xff]  ;;  %v475_v63 = vld [vmem:[#allocation8 + $0x38] sm:$0xff] }
  0x85   :  { %1232 = vmatprep.subr.mxu0 %v1766_v0  ;;  %1267 = vmatprep.subr.mxu1 %v1766_v0  ;;  %v474_v1 = vld [vmem:[#allocation8 + $0x30] sm:$0xff]  ;;  %v473_v2 = vld [vmem:[#allocation8 + $0x28] sm:$0xff]  ;;  %v472_v3 = vld [vmem:[#allocation8 + $0x20] sm:$0xff] }
  0x86   :  { %1233 = vmatpush3.msra.mxu0 %v192_v17  ;;  %1268 = vmatpush3.msra.mxu1 %v286_v22  ;;  %v471_v4 = vld [vmem:[#allocation8 + $0x18] sm:$0xff]  ;;  %v1053_v5 = vld [vmem:[%s2122_s4] ss:$0 sm:$0xff]  ;;  %v470_v10 = vld [vmem:[#allocation8 + $0x10] sm:$0xff] }
  0x87   :  { %1234 = vmatprep.subr.mxu0 %v1766_v0  ;;  %1269 = vmatprep.subr.mxu1 %v1766_v0  ;;  %v469_v11 = vld [vmem:[#allocation8 + $0x8] sm:$0xff]  ;;  %v468_v12 = vld [vmem:[#allocation8] sm:$0xff]  ;;  %v577_v13 = vld [vmem:[#allocation10 + $0x78] sm:$0xff] }
  0x88   :  { %1235 = vmatpush3.msra.mxu0 %v191_v19  ;;  %1270 = vmatpush3.msra.mxu1 %v285_v24  ;;  %v576_v14 = vld [vmem:[#allocation10 + $0x70] sm:$0xff]  ;;  %v575_v15 = vld [vmem:[#allocation10 + $0x68] sm:$0xff]  ;;  %v574_v16 = vld [vmem:[#allocation10 + $0x60] sm:$0xff] }
  0x89   :  { %1236 = vmatprep.subr.mxu0 %v1766_v0  ;;  %1271 = vmatprep.subr.mxu1 %v1766_v0  ;;  %v573_v17 = vld [vmem:[#allocation10 + $0x58] sm:$0xff]  ;;  %v572_v18 = vld [vmem:[#allocation10 + $0x50] sm:$0xff]  ;;  %v571_v19 = vld [vmem:[#allocation10 + $0x48] sm:$0xff] }
  0x8a   :  { %1237 = vmatpush3.msra.mxu0 %v190_v21  ;;  %1272 = vmatpush3.msra.mxu1 %v284_v26  ;;  %v570_v20 = vld [vmem:[#allocation10 + $0x40] sm:$0xff]  ;;  %v569_v21 = vld [vmem:[#allocation10 + $0x38] sm:$0xff]  ;;  %v568_v22 = vld [vmem:[#allocation10 + $0x30] sm:$0xff] }
  0x8b   :  { %1238 = vmatprep.subr.mxu0 %v1766_v0  ;;  %1273 = vmatprep.subr.mxu1 %v1766_v0  ;;  %v566_v24 = vld [vmem:[#allocation10 + $0x20] sm:$0xff] }
  0x8c   :  { %1239 = vmatpush3.msra.mxu0 %v189_v23  ;;  %1274 = vmatpush3.msra.mxu1 %v283_v28  ;;  %v567_v23 = vld [vmem:[#allocation10 + $0x28] sm:$0xff]  ;;  %v1054_v26 = vld [vmem:[%s2124_s6] ss:$0 sm:$0xff] }
  0x8d   :  { %1240 = vmatprep.subr.mxu0 %v1766_v0  ;;  %1275 = vmatprep.subr.mxu1 %v1766_v0 }
  0x8e   :  { %1241 = vmatpush3.msra.mxu0 %v188_v25  ;;  %1276 = vmatpush3.msra.mxu1 %v282_v31  ;;  %v565_v25 = vld [vmem:[#allocation10 + $0x18] sm:$0xff]  ;;  %v564_v31 = vld [vmem:[#allocation10 + $0x10] sm:$0xff] }
  0x8f   :  { %1242 = vmatprep.subr.mxu0 %v1766_v0  ;;  %1277 = vmatprep.subr.mxu1 %v1766_v0 }
  0x90   :  { %1243 = vmatpush3.msra.mxu0 %v187_v27  ;;  %1278 = vmatpush3.msra.mxu1 %v281_v32  ;;  %v563_v32 = vld [vmem:[#allocation10 + $0x8] sm:$0xff] }
  0x91   :  { %1244 = vmatprep.subr.mxu0 %v1766_v0  ;;  %1279 = vmatprep.subr.mxu1 %v1766_v0 }
  0x92   :  { %1245 = vmatpush3.msra.mxu0 %v186_v29  ;;  %1280 = vmatpush3.msra.mxu1 %v280_v33  ;;  %v562_v33 = vld [vmem:[#allocation10] sm:$0xff] }
  0x93   :  { %1247 = vmatmul.mubr.f32.vlgmr.msra.gmra.mxu0 %v185_v30  ;;  %1284 = vmatprep.subr.mxu0 %v1766_v0 }
  0x94   :  { %1316 = vmatprep.mubr.msk.f32.mxu0 %vm1767_vm0, %v1766_v0  ;;  %1319 = vmatprep.subr.mxu1 %v1766_v0 }
  0x95   :  { %1285 = vmatpush3.msra.mxu0 %v389_v34  ;;  %v671_v34 = vld [vmem:[#allocation11 + $0x78] sm:$0xff] }
  0x96   :  { %1286 = vmatprep.subr.mxu0 %v1766_v0 }
  0x97   :  { %1287 = vmatpush3.msra.mxu0 %v388_v35  ;;  %v670_v35 = vld [vmem:[#allocation11 + $0x70] sm:$0xff] }
  0x98   :  { %1288 = vmatprep.subr.mxu0 %v1766_v0 }
  0x99   :  { %1289 = vmatpush3.msra.mxu0 %v387_v36  ;;  %v669_v36 = vld [vmem:[#allocation11 + $0x68] sm:$0xff] }
  0x9a   :  { %1290 = vmatprep.subr.mxu0 %v1766_v0 }
  0x9b   :  { %1291 = vmatpush3.msra.mxu0 %v386_v37  ;;  %v668_v37 = vld [vmem:[#allocation11 + $0x60] sm:$0xff] }
  0x9c   :  { %1292 = vmatprep.subr.mxu0 %v1766_v0 }
  0x9d   :  { %1293 = vmatpush3.msra.mxu0 %v385_v38  ;;  %v667_v38 = vld [vmem:[#allocation11 + $0x58] sm:$0xff] }
  0x9e   :  { %1294 = vmatprep.subr.mxu0 %v1766_v0 }
  0x9f   :  { %1295 = vmatpush3.msra.mxu0 %v384_v39  ;;  %v666_v39 = vld [vmem:[#allocation11 + $0x50] sm:$0xff] }
  0xa0   :  { %1296 = vmatprep.subr.mxu0 %v1766_v0 }
  0xa1   :  { %1297 = vmatpush3.msra.mxu0 %v383_v40  ;;  %v665_v40 = vld [vmem:[#allocation11 + $0x48] sm:$0xff] }
  0xa2   :  { %1298 = vmatprep.subr.mxu0 %v1766_v0 }
  0xa3   :  { %1299 = vmatpush3.msra.mxu0 %v382_v41  ;;  %v664_v41 = vld [vmem:[#allocation11 + $0x40] sm:$0xff] }
  0xa4   :  { %1300 = vmatprep.subr.mxu0 %v1766_v0 }
  0xa5   :  { %1301 = vmatpush3.msra.mxu0 %v381_v42  ;;  %v663_v42 = vld [vmem:[#allocation11 + $0x38] sm:$0xff] }
  0xa6   :  { %1302 = vmatprep.subr.mxu0 %v1766_v0 }
  0xa7   :  { %1303 = vmatpush3.msra.mxu0 %v380_v43  ;;  %v662_v43 = vld [vmem:[#allocation11 + $0x30] sm:$0xff] }
  0xa8   :  { %1304 = vmatprep.subr.mxu0 %v1766_v0 }
  0xa9   :  { %1305 = vmatpush3.msra.mxu0 %v379_v44  ;;  %v661_v44 = vld [vmem:[#allocation11 + $0x28] sm:$0xff] }
  0xaa   :  { %1306 = vmatprep.subr.mxu0 %v1766_v0 }
  0xab   :  { %1307 = vmatpush3.msra.mxu0 %v378_v45  ;;  %v660_v45 = vld [vmem:[#allocation11 + $0x20] sm:$0xff] }
  0xac   :  { %1308 = vmatprep.subr.mxu0 %v1766_v0 }
  0xad   :  { %1309 = vmatpush3.msra.mxu0 %v377_v46  ;;  %v659_v46 = vld [vmem:[#allocation11 + $0x18] sm:$0xff] }
  0xae   :  { %1310 = vmatprep.subr.mxu0 %v1766_v0 }
  0xaf   :  { %1311 = vmatpush3.msra.mxu0 %v376_v52  ;;  %v658_v52 = vld [vmem:[#allocation11 + $0x10] sm:$0xff] }
  0xb0   :  { %1312 = vmatprep.subr.mxu0 %v1766_v0 }
  0xb1   :  { %1313 = vmatpush3.msra.mxu0 %v375_v53  ;;  %v657_v53 = vld [vmem:[#allocation11 + $0x8] sm:$0xff] }
  0xb2   :  { %1314 = vmatprep.subr.mxu0 %v1766_v0 }
  0xb3   :  { %1315 = vmatpush3.msra.mxu0 %v374_v54  ;;  %v656_v54 = vld [vmem:[#allocation11] sm:$0xff] }
  0xb4   :  { %1354 = vmatprep.subr.mxu0 %v1766_v0 }
 0x153   :  { %v275_v48 = vpop.f32.mrf.mxu0 }
 0x154   :  { %v276_v49 = vadd.f32 %v1052_v47, %v275_v48  ;;  %v1055_v47 = vld [vmem:[%s2126_s8] ss:$0 sm:$0xff] }
 0x155   :  { %v1248_v50 = vpop.f32.mrf.mxu0 }
 0x156   :  { %v279_v51 = vmax.f32 %v276_v49, 0.0 }
 0x158   :  { %1282 = vmatmul.mubr.f32.vlgmr.msra.gmra.mxu1 %v279_v51 }
 0x159   :  { %1351 = vmatprep.mubr.msk.f32.mxu1 %vm1767_vm0, %v1766_v0  ;;  %1320 = vmatpush3.msra.mxu1 %v483_v55  ;;  %v765_v55 = vld [vmem:[#allocation13 + $0x78] sm:$0xff] }
 0x15a   :  { %1321 = vmatprep.subr.mxu1 %v1766_v0 }
 0x15b   :  { %1322 = vmatpush3.msra.mxu1 %v482_v56  ;;  %v764_v56 = vld [vmem:[#allocation13 + $0x70] sm:$0xff] }
 0x15c   :  { %1323 = vmatprep.subr.mxu1 %v1766_v0 }
 0x15d   :  { %1324 = vmatpush3.msra.mxu1 %v481_v57  ;;  %v763_v57 = vld [vmem:[#allocation13 + $0x68] sm:$0xff] }
 0x15e   :  { %1325 = vmatprep.subr.mxu1 %v1766_v0 }
 0x15f   :  { %1326 = vmatpush3.msra.mxu1 %v480_v58  ;;  %v762_v58 = vld [vmem:[#allocation13 + $0x60] sm:$0xff] }
 0x160   :  { %1327 = vmatprep.subr.mxu1 %v1766_v0 }
 0x161   :  { %1328 = vmatpush3.msra.mxu1 %v479_v59  ;;  %v761_v59 = vld [vmem:[#allocation13 + $0x58] sm:$0xff] }
 0x162   :  { %1329 = vmatprep.subr.mxu1 %v1766_v0 }
 0x163   :  { %1330 = vmatpush3.msra.mxu1 %v478_v60  ;;  %v760_v60 = vld [vmem:[#allocation13 + $0x50] sm:$0xff] }
 0x164   :  { %1331 = vmatprep.subr.mxu1 %v1766_v0 }
 0x165   :  { %1332 = vmatpush3.msra.mxu1 %v477_v61  ;;  %v759_v61 = vld [vmem:[#allocation13 + $0x48] sm:$0xff] }
 0x166   :  { %1333 = vmatprep.subr.mxu1 %v1766_v0 }
 0x167   :  { %1334 = vmatpush3.msra.mxu1 %v476_v62  ;;  %v758_v62 = vld [vmem:[#allocation13 + $0x40] sm:$0xff] }
 0x168   :  { %1335 = vmatprep.subr.mxu1 %v1766_v0 }
 0x169   :  { %1336 = vmatpush3.msra.mxu1 %v475_v63  ;;  %v757_v63 = vld [vmem:[#allocation13 + $0x38] sm:$0xff] }
 0x16a   :  { %1337 = vmatprep.subr.mxu1 %v1766_v0 }
 0x16b   :  { %1338 = vmatpush3.msra.mxu1 %v474_v1  ;;  %v756_v1 = vld [vmem:[#allocation13 + $0x30] sm:$0xff] }
 0x16c   :  { %1339 = vmatprep.subr.mxu1 %v1766_v0 }
 0x16d   :  { %1340 = vmatpush3.msra.mxu1 %v473_v2  ;;  %v755_v2 = vld [vmem:[#allocation13 + $0x28] sm:$0xff] }
 0x16e   :  { %1341 = vmatprep.subr.mxu1 %v1766_v0 }
 0x16f   :  { %1342 = vmatpush3.msra.mxu1 %v472_v3  ;;  %v754_v3 = vld [vmem:[#allocation13 + $0x20] sm:$0xff] }
 0x170   :  { %1343 = vmatprep.subr.mxu1 %v1766_v0 }
 0x171   :  { %1344 = vmatpush3.msra.mxu1 %v471_v4  ;;  %v753_v4 = vld [vmem:[#allocation13 + $0x18] sm:$0xff] }
 0x172   :  { %1345 = vmatprep.subr.mxu1 %v1766_v0 }
 0x173   :  { %1346 = vmatpush3.msra.mxu1 %v470_v10  ;;  %v752_v10 = vld [vmem:[#allocation13 + $0x10] sm:$0xff] }
 0x174   :  { %1347 = vmatprep.subr.mxu1 %v1766_v0 }
 0x175   :  { %1348 = vmatpush3.msra.mxu1 %v469_v11  ;;  %v751_v11 = vld [vmem:[#allocation13 + $0x8] sm:$0xff] }
 0x176   :  { %1349 = vmatprep.subr.mxu1 %v1766_v0 }
 0x177   :  { %1350 = vmatpush3.msra.mxu1 %v468_v12  ;;  %v750_v12 = vld [vmem:[#allocation13] sm:$0xff] }
 0x178   :  { %1389 = vmatprep.subr.mxu1 %v1766_v0 }
 0x218   :  { %v369_v6 = vpop.f32.mrf.mxu1 }
 0x219   :  { %v370_v7 = vadd.f32 %v1053_v5, %v369_v6  ;;  %v1056_v5 = vld [vmem:[%s2128_s10] ss:$0 sm:$0xff] }
 0x21a   :  { %v1283_v8 = vpop.f32.mrf.mxu1 }
 0x21b   :  { %v373_v9 = vmax.f32 %v370_v7, 0.0 }
 0x21d   :  { %1317 = vmatmul.mubr.f32.vlgmr.msra.gmra.mxu0 %v373_v9 }
 0x21e   :  { %1386 = vmatprep.mubr.msk.f32.mxu0 %vm1767_vm0, %v1766_v0  ;;  %1355 = vmatpush3.msra.mxu0 %v577_v13  ;;  %v859_v13 = vld [vmem:[#allocation14 + $0x78] sm:$0xff] }
 0x21f   :  { %1356 = vmatprep.subr.mxu0 %v1766_v0 }
 0x220   :  { %1357 = vmatpush3.msra.mxu0 %v576_v14  ;;  %v858_v14 = vld [vmem:[#allocation14 + $0x70] sm:$0xff] }
 0x221   :  { %1358 = vmatprep.subr.mxu0 %v1766_v0 }
 0x222   :  { %1359 = vmatpush3.msra.mxu0 %v575_v15  ;;  %v857_v15 = vld [vmem:[#allocation14 + $0x68] sm:$0xff] }
 0x223   :  { %1360 = vmatprep.subr.mxu0 %v1766_v0 }
 0x224   :  { %1361 = vmatpush3.msra.mxu0 %v574_v16  ;;  %v856_v16 = vld [vmem:[#allocation14 + $0x60] sm:$0xff] }
 0x225   :  { %1362 = vmatprep.subr.mxu0 %v1766_v0 }
 0x226   :  { %1363 = vmatpush3.msra.mxu0 %v573_v17  ;;  %v855_v17 = vld [vmem:[#allocation14 + $0x58] sm:$0xff] }
 0x227   :  { %1364 = vmatprep.subr.mxu0 %v1766_v0 }
 0x228   :  { %1365 = vmatpush3.msra.mxu0 %v572_v18  ;;  %v854_v18 = vld [vmem:[#allocation14 + $0x50] sm:$0xff] }
 0x229   :  { %1366 = vmatprep.subr.mxu0 %v1766_v0 }
 0x22a   :  { %1367 = vmatpush3.msra.mxu0 %v571_v19  ;;  %v853_v19 = vld [vmem:[#allocation14 + $0x48] sm:$0xff] }
 0x22b   :  { %1368 = vmatprep.subr.mxu0 %v1766_v0 }
 0x22c   :  { %1369 = vmatpush3.msra.mxu0 %v570_v20  ;;  %v852_v20 = vld [vmem:[#allocation14 + $0x40] sm:$0xff] }
 0x22d   :  { %1370 = vmatprep.subr.mxu0 %v1766_v0 }
 0x22e   :  { %1371 = vmatpush3.msra.mxu0 %v569_v21  ;;  %v851_v21 = vld [vmem:[#allocation14 + $0x38] sm:$0xff] }
 0x22f   :  { %1372 = vmatprep.subr.mxu0 %v1766_v0 }
 0x230   :  { %1373 = vmatpush3.msra.mxu0 %v568_v22  ;;  %v850_v22 = vld [vmem:[#allocation14 + $0x30] sm:$0xff] }
 0x231   :  { %1374 = vmatprep.subr.mxu0 %v1766_v0 }
 0x232   :  { %1375 = vmatpush3.msra.mxu0 %v567_v23  ;;  %v849_v23 = vld [vmem:[#allocation14 + $0x28] sm:$0xff] }
 0x233   :  { %1376 = vmatprep.subr.mxu0 %v1766_v0 }
 0x234   :  { %1377 = vmatpush3.msra.mxu0 %v566_v24  ;;  %v848_v24 = vld [vmem:[#allocation14 + $0x20] sm:$0xff] }
 0x235   :  { %1378 = vmatprep.subr.mxu0 %v1766_v0 }
 0x236   :  { %1379 = vmatpush3.msra.mxu0 %v565_v25  ;;  %v847_v25 = vld [vmem:[#allocation14 + $0x18] sm:$0xff] }
 0x237   :  { %1380 = vmatprep.subr.mxu0 %v1766_v0 }
 0x238   :  { %1381 = vmatpush3.msra.mxu0 %v564_v31  ;;  %v846_v31 = vld [vmem:[#allocation14 + $0x10] sm:$0xff] }
 0x239   :  { %1382 = vmatprep.subr.mxu0 %v1766_v0 }
 0x23a   :  { %1383 = vmatpush3.msra.mxu0 %v563_v32  ;;  %v845_v32 = vld [vmem:[#allocation14 + $0x8] sm:$0xff] }
 0x23b   :  { %1384 = vmatprep.subr.mxu0 %v1766_v0 }
 0x23c   :  { %1385 = vmatpush3.msra.mxu0 %v562_v33  ;;  %v844_v33 = vld [vmem:[#allocation14] sm:$0xff] }
 0x23d   :  { %1424 = vmatprep.subr.mxu0 %v1766_v0 }
 0x2dd   :  { %v463_v27 = vpop.f32.mrf.mxu0 }
 0x2de   :  { %v464_v28 = vadd.f32 %v1054_v26, %v463_v27  ;;  %v1057_v26 = vld [vmem:[%s2130_s12] ss:$0 sm:$0xff] }
 0x2df   :  { %v1318_v29 = vpop.f32.mrf.mxu0 }
 0x2e0   :  { %v467_v30 = vmax.f32 %v464_v28, 0.0 }
 0x2e2   :  { %1352 = vmatmul.mubr.f32.vlgmr.msra.gmra.mxu1 %v467_v30 }
 0x2e3   :  { %1421 = vmatprep.mubr.msk.f32.mxu1 %vm1767_vm0, %v1766_v0  ;;  %1390 = vmatpush3.msra.mxu1 %v671_v34  ;;  %v953_v34 = vld [vmem:[#allocation16 + $0x78] sm:$0xff] }
 0x2e4   :  { %1391 = vmatprep.subr.mxu1 %v1766_v0 }
 0x2e5   :  { %1392 = vmatpush3.msra.mxu1 %v670_v35  ;;  %v952_v35 = vld [vmem:[#allocation16 + $0x70] sm:$0xff] }
 0x2e6   :  { %1393 = vmatprep.subr.mxu1 %v1766_v0 }
 0x2e7   :  { %1394 = vmatpush3.msra.mxu1 %v669_v36  ;;  %v951_v36 = vld [vmem:[#allocation16 + $0x68] sm:$0xff] }
 0x2e8   :  { %1395 = vmatprep.subr.mxu1 %v1766_v0 }
 0x2e9   :  { %1396 = vmatpush3.msra.mxu1 %v668_v37  ;;  %v950_v37 = vld [vmem:[#allocation16 + $0x60] sm:$0xff] }
 0x2ea   :  { %1397 = vmatprep.subr.mxu1 %v1766_v0 }
 0x2eb   :  { %1398 = vmatpush3.msra.mxu1 %v667_v38  ;;  %v949_v38 = vld [vmem:[#allocation16 + $0x58] sm:$0xff] }
 0x2ec   :  { %1399 = vmatprep.subr.mxu1 %v1766_v0 }
 0x2ed   :  { %1400 = vmatpush3.msra.mxu1 %v666_v39  ;;  %v948_v39 = vld [vmem:[#allocation16 + $0x50] sm:$0xff] }
 0x2ee   :  { %1401 = vmatprep.subr.mxu1 %v1766_v0 }
 0x2ef   :  { %1402 = vmatpush3.msra.mxu1 %v665_v40  ;;  %v947_v40 = vld [vmem:[#allocation16 + $0x48] sm:$0xff] }
 0x2f0   :  { %1403 = vmatprep.subr.mxu1 %v1766_v0 }
 0x2f1   :  { %1404 = vmatpush3.msra.mxu1 %v664_v41  ;;  %v946_v41 = vld [vmem:[#allocation16 + $0x40] sm:$0xff] }
 0x2f2   :  { %1405 = vmatprep.subr.mxu1 %v1766_v0 }
 0x2f3   :  { %1406 = vmatpush3.msra.mxu1 %v663_v42  ;;  %v945_v42 = vld [vmem:[#allocation16 + $0x38] sm:$0xff] }
 0x2f4   :  { %1407 = vmatprep.subr.mxu1 %v1766_v0 }
 0x2f5   :  { %1408 = vmatpush3.msra.mxu1 %v662_v43  ;;  %v944_v43 = vld [vmem:[#allocation16 + $0x30] sm:$0xff] }
 0x2f6   :  { %1409 = vmatprep.subr.mxu1 %v1766_v0 }
 0x2f7   :  { %1410 = vmatpush3.msra.mxu1 %v661_v44  ;;  %v943_v44 = vld [vmem:[#allocation16 + $0x28] sm:$0xff] }
 0x2f8   :  { %1411 = vmatprep.subr.mxu1 %v1766_v0 }
 0x2f9   :  { %1412 = vmatpush3.msra.mxu1 %v660_v45  ;;  %v942_v45 = vld [vmem:[#allocation16 + $0x20] sm:$0xff] }
 0x2fa   :  { %1413 = vmatprep.subr.mxu1 %v1766_v0 }
 0x2fb   :  { %1414 = vmatpush3.msra.mxu1 %v659_v46  ;;  %v941_v46 = vld [vmem:[#allocation16 + $0x18] sm:$0xff] }
 0x2fc   :  { %1415 = vmatprep.subr.mxu1 %v1766_v0 }
 0x2fd   :  { %1416 = vmatpush3.msra.mxu1 %v658_v52  ;;  %v940_v52 = vld [vmem:[#allocation16 + $0x10] sm:$0xff] }
 0x2fe   :  { %1417 = vmatprep.subr.mxu1 %v1766_v0 }
 0x2ff   :  { %1418 = vmatpush3.msra.mxu1 %v657_v53  ;;  %v939_v53 = vld [vmem:[#allocation16 + $0x8] sm:$0xff] }
 0x300   :  { %1419 = vmatprep.subr.mxu1 %v1766_v0 }
 0x301   :  { %1420 = vmatpush3.msra.mxu1 %v656_v54  ;;  %v938_v54 = vld [vmem:[#allocation16] sm:$0xff] }
 0x302   :  { %1459 = vmatprep.subr.mxu1 %v1766_v0 }
 0x3a2   :  { %v557_v48 = vpop.f32.mrf.mxu1 }
 0x3a3   :  { %v558_v49 = vadd.f32 %v1055_v47, %v557_v48  ;;  %v1058_v47 = vld [vmem:[%s2132_s14] ss:$0 sm:$0xff] }
 0x3a4   :  { %v1353_v50 = vpop.f32.mrf.mxu1 }
 0x3a5   :  { %v561_v51 = vmax.f32 %v558_v49, 0.0 }
 0x3a7   :  { %1387 = vmatmul.mubr.f32.vlgmr.msra.gmra.mxu0 %v561_v51 }
 0x3a8   :  { %1456 = vmatprep.mubr.msk.f32.mxu0 %vm1767_vm0, %v1766_v0  ;;  %1425 = vmatpush3.msra.mxu0 %v765_v55  ;;  %v1059_v55 = vld [vmem:[%s2134_s16] ss:$0 sm:$0xff] }
 0x3a9   :  { %1426 = vmatprep.subr.mxu0 %v1766_v0 }
 0x3aa   :  { %1427 = vmatpush3.msra.mxu0 %v764_v56 }
 0x3ab   :  { %1428 = vmatprep.subr.mxu0 %v1766_v0 }
 0x3ac   :  { %1429 = vmatpush3.msra.mxu0 %v763_v57 }
 0x3ad   :  { %1430 = vmatprep.subr.mxu0 %v1766_v0 }
 0x3ae   :  { %1431 = vmatpush3.msra.mxu0 %v762_v58 }
 0x3af   :  { %1432 = vmatprep.subr.mxu0 %v1766_v0 }
 0x3b0   :  { %1433 = vmatpush3.msra.mxu0 %v761_v59 }
 0x3b1   :  { %1434 = vmatprep.subr.mxu0 %v1766_v0 }
 0x3b2   :  { %1435 = vmatpush3.msra.mxu0 %v760_v60  ;;  %v1060_v60 = vld [vmem:[%s2136_s18] ss:$0 sm:$0xff] }
 0x3b3   :  { %1436 = vmatprep.subr.mxu0 %v1766_v0 }
 0x3b4   :  { %1437 = vmatpush3.msra.mxu0 %v759_v61 }
 0x3b5   :  { %1438 = vmatprep.subr.mxu0 %v1766_v0 }
 0x3b6   :  { %1439 = vmatpush3.msra.mxu0 %v758_v62 }
 0x3b7   :  { %1440 = vmatprep.subr.mxu0 %v1766_v0 }
 0x3b8   :  { %1441 = vmatpush3.msra.mxu0 %v757_v63 }
 0x3b9   :  { %1442 = vmatprep.subr.mxu0 %v1766_v0 }
 0x3ba   :  { %1443 = vmatpush3.msra.mxu0 %v756_v1 }
 0x3bb   :  { %1444 = vmatprep.subr.mxu0 %v1766_v0 }
 0x3bc   :  { %1445 = vmatpush3.msra.mxu0 %v755_v2 }
 0x3bd   :  { %1446 = vmatprep.subr.mxu0 %v1766_v0 }
 0x3be   :  { %1447 = vmatpush3.msra.mxu0 %v754_v3 }
 0x3bf   :  { %1448 = vmatprep.subr.mxu0 %v1766_v0 }
 0x3c0   :  { %1449 = vmatpush3.msra.mxu0 %v753_v4 }
 0x3c1   :  { %1450 = vmatprep.subr.mxu0 %v1766_v0 }
 0x3c2   :  { %1451 = vmatpush3.msra.mxu0 %v752_v10 }
 0x3c3   :  { %1452 = vmatprep.subr.mxu0 %v1766_v0 }
 0x3c4   :  { %1453 = vmatpush3.msra.mxu0 %v751_v11 }
 0x3c5   :  { %1454 = vmatprep.subr.mxu0 %v1766_v0 }
 0x3c6   :  { %1455 = vmatpush3.msra.mxu0 %v750_v12 }
 0x3c7   :  { %1494 = vmatprep.subr.mxu0 %v1766_v0 }
 0x467   :  { %v651_v6 = vpop.f32.mrf.mxu0 }
 0x468   :  { %v652_v7 = vadd.f32 %v1056_v5, %v651_v6 }
 0x469   :  { %v1388_v8 = vpop.f32.mrf.mxu0 }
 0x46a   :  { %v655_v9 = vmax.f32 %v652_v7, 0.0 }
 0x46c   :  { %1422 = vmatmul.mubr.f32.vlgmr.msra.gmra.mxu1 %v655_v9 }
 0x46d   :  { %1491 = vmatprep.mubr.msk.f32.mxu1 %vm1767_vm0, %v1766_v0  ;;  %1460 = vmatpush3.msra.mxu1 %v859_v13 }
 0x46e   :  { %1461 = vmatprep.subr.mxu1 %v1766_v0 }
 0x46f   :  { %1462 = vmatpush3.msra.mxu1 %v858_v14 }
 0x470   :  { %1463 = vmatprep.subr.mxu1 %v1766_v0 }
 0x471   :  { %1464 = vmatpush3.msra.mxu1 %v857_v15 }
 0x472   :  { %1465 = vmatprep.subr.mxu1 %v1766_v0 }
 0x473   :  { %1466 = vmatpush3.msra.mxu1 %v856_v16 }
 0x474   :  { %1467 = vmatprep.subr.mxu1 %v1766_v0 }
 0x475   :  { %1468 = vmatpush3.msra.mxu1 %v855_v17 }
 0x476   :  { %1469 = vmatprep.subr.mxu1 %v1766_v0 }
 0x477   :  { %1470 = vmatpush3.msra.mxu1 %v854_v18 }
 0x478   :  { %1471 = vmatprep.subr.mxu1 %v1766_v0 }
 0x479   :  { %1472 = vmatpush3.msra.mxu1 %v853_v19 }
 0x47a   :  { %1473 = vmatprep.subr.mxu1 %v1766_v0 }
 0x47b   :  { %1474 = vmatpush3.msra.mxu1 %v852_v20 }
 0x47c   :  { %1475 = vmatprep.subr.mxu1 %v1766_v0 }
 0x47d   :  { %1476 = vmatpush3.msra.mxu1 %v851_v21 }
 0x47e   :  { %1477 = vmatprep.subr.mxu1 %v1766_v0 }
 0x47f   :  { %1478 = vmatpush3.msra.mxu1 %v850_v22 }
 0x480   :  { %1479 = vmatprep.subr.mxu1 %v1766_v0 }
 0x481   :  { %1480 = vmatpush3.msra.mxu1 %v849_v23 }
 0x482   :  { %1481 = vmatprep.subr.mxu1 %v1766_v0 }
 0x483   :  { %1482 = vmatpush3.msra.mxu1 %v848_v24 }
 0x484   :  { %1483 = vmatprep.subr.mxu1 %v1766_v0 }
 0x485   :  { %1484 = vmatpush3.msra.mxu1 %v847_v25 }
 0x486   :  { %1485 = vmatprep.subr.mxu1 %v1766_v0 }
 0x487   :  { %1486 = vmatpush3.msra.mxu1 %v846_v31 }
 0x488   :  { %1487 = vmatprep.subr.mxu1 %v1766_v0 }
 0x489   :  { %1488 = vmatpush3.msra.mxu1 %v845_v32 }
 0x48a   :  { %1489 = vmatprep.subr.mxu1 %v1766_v0 }
 0x48b   :  { %1490 = vmatpush3.msra.mxu1 %v844_v33 }
 0x52c   :  { %v745_v27 = vpop.f32.mrf.mxu1 }
 0x52d   :  { %v746_v28 = vadd.f32 %v1057_v26, %v745_v27 }
 0x52e   :  { %v1423_v29 = vpop.f32.mrf.mxu1 }
 0x52f   :  { %v749_v30 = vmax.f32 %v746_v28, 0.0 }
 0x531   :  { %1457 = vmatmul.mubr.f32.vlgmr.msra.gmra.mxu0 %v749_v30 }
 0x532   :  { %1526 = vmatprep.mubr.msk.f32.mxu0 %vm1767_vm0, %v1766_v0  ;;  %1495 = vmatpush3.msra.mxu0 %v953_v34 }
 0x533   :  { %1496 = vmatprep.subr.mxu0 %v1766_v0 }
 0x534   :  { %1497 = vmatpush3.msra.mxu0 %v952_v35 }
 0x535   :  { %1498 = vmatprep.subr.mxu0 %v1766_v0 }
 0x536   :  { %1499 = vmatpush3.msra.mxu0 %v951_v36 }
 0x537   :  { %1500 = vmatprep.subr.mxu0 %v1766_v0 }
 0x538   :  { %1501 = vmatpush3.msra.mxu0 %v950_v37 }
 0x539   :  { %1502 = vmatprep.subr.mxu0 %v1766_v0 }
 0x53a   :  { %1503 = vmatpush3.msra.mxu0 %v949_v38 }
 0x53b   :  { %1504 = vmatprep.subr.mxu0 %v1766_v0 }
 0x53c   :  { %1505 = vmatpush3.msra.mxu0 %v948_v39 }
 0x53d   :  { %1506 = vmatprep.subr.mxu0 %v1766_v0 }
 0x53e   :  { %1507 = vmatpush3.msra.mxu0 %v947_v40 }
 0x53f   :  { %1508 = vmatprep.subr.mxu0 %v1766_v0 }
 0x540   :  { %1509 = vmatpush3.msra.mxu0 %v946_v41 }
 0x541   :  { %1510 = vmatprep.subr.mxu0 %v1766_v0 }
 0x542   :  { %1511 = vmatpush3.msra.mxu0 %v945_v42 }
 0x543   :  { %1512 = vmatprep.subr.mxu0 %v1766_v0 }
 0x544   :  { %1513 = vmatpush3.msra.mxu0 %v944_v43 }
 0x545   :  { %1514 = vmatprep.subr.mxu0 %v1766_v0 }
 0x546   :  { %1515 = vmatpush3.msra.mxu0 %v943_v44 }
 0x547   :  { %1516 = vmatprep.subr.mxu0 %v1766_v0 }
 0x548   :  { %1517 = vmatpush3.msra.mxu0 %v942_v45 }
 0x549   :  { %1518 = vmatprep.subr.mxu0 %v1766_v0 }
 0x54a   :  { %1519 = vmatpush3.msra.mxu0 %v941_v46 }
 0x54b   :  { %1520 = vmatprep.subr.mxu0 %v1766_v0 }
 0x54c   :  { %1521 = vmatpush3.msra.mxu0 %v940_v52 }
 0x54d   :  { %1522 = vmatprep.subr.mxu0 %v1766_v0 }
 0x54e   :  { %1523 = vmatpush3.msra.mxu0 %v939_v53 }
 0x54f   :  { %1524 = vmatprep.subr.mxu0 %v1766_v0 }
 0x550   :  { %1525 = vmatpush3.msra.mxu0 %v938_v54 }
 0x5f1   :  { %v839_v48 = vpop.f32.mrf.mxu0 }
 0x5f2   :  { %v840_v49 = vadd.f32 %v1058_v47, %v839_v48 }
 0x5f3   :  { %v1458_v50 = vpop.f32.mrf.mxu0 }
 0x5f4   :  { %v843_v51 = vmax.f32 %v840_v49, 0.0 }
 0x5f6   :  { %1492 = vmatmul.mubr.f32.vlgmr.msra.gmra.mxu1 %v843_v51 }
 0x6b6   :  { %v933_v56 = vpop.f32.mrf.mxu1 }
 0x6b7   :  { %v934_v57 = vadd.f32 %v1059_v55, %v933_v56 }
 0x6b8   :  { %v1493_v58 = vpop.f32.mrf.mxu1 }
 0x6b9   :  { %v937_v59 = vmax.f32 %v934_v57, 0.0 }
 0x6bb   :  { %1527 = vmatmul.mubr.f32.vlgmr.msra.gmra.mxu0 %v937_v59 }
 0x77b   :  { %v1027_v61 = vpop.f32.mrf.mxu0 }
 0x77c   :  { %v1028_v62 = vadd.f32 %v1060_v60, %v1027_v61 }
 0x77d   :  { %v1528_v0 = vpop.f32.mrf.mxu0 }
 0x77e   :  { %v1031_v63 = vmax.f32 %v1028_v62, 0.0 }
 0x780   :  { %1032 = vst [vmem:[#allocation17] sm:$0xff] %v1031_v63 }
 0x781   :  { %1734 = shalt.err (!%p1731_p7)
}
 0x782   :  { %1042 = dma.vmem_to_hbm [thread:$0]  %s1040_s11, 128, %s2137_s19, [#allocation4]  }
 0x783   :  { %1753 = dma.done.wait [#allocation4], 128  }
 0x784   :  { %1754 = vsyncadd [#allocation4], 4294967168 }
 0x785   :  { %1046 = vsyncpa [#allocation3], 1 }
 0x786   :  { %1047 = vsyncpa [#allocation6], 1 }
 0x787   :  { %1048 = vsyncpa [#allocation9], 1 }
 0x788   :  { %1049 = vsyncpa [#allocation12], 1 }
 0x789   :  { %1050 = vsyncpa [#allocation15], 1 }
 0x78a   :  { %1051 = vsyncpa [#allocation4], 1 }

</bundles_post_ra>
